<compile_context>
chip_gen: v6e
topology: v6e:2x2x1
jax: 0.10.0
libtpu: 0.0.40
codegen_flags: <defaults>
</compile_context>

<pallas_src>
import functools
import math

import numpy as np
import jax
import jax.numpy as jnp
from jax import lax
from jax.experimental import pallas as pl
from jax.experimental.pallas import tpu as pltpu


def _convt_phase_kernel(x_ref, w_ref, b_ref, o_ref, *, M, Wpad, L):
    """One (batch, row-block) step: all s*s phases for TQ output-quotient rows.

    x_ref: (1, 1, Cin, Lb)      row-block of the zero-haloed input; rows flattened
                                onto the lane axis with stride Wpad
                                (Lb >= (TQ+M-1)*Wpad + M-1, lane-padded to 128)
    w_ref: (M*M, P*Cout, Cin)   packed sub-pixel tap weights (0 for taps outside KxK)
    b_ref: (P*Cout, 1)          bias replicated over the s*s phases
    o_ref: (1, 1, P*Cout, L)    phase-major output slab, L = TQ*Wpad flattened (row,col)
    """
    xs = x_ref[0, 0, :, :]                        # (Cin, Lb), loaded once
    PC = w_ref.shape[1]
    # Bias folded into the accumulator init (hoisted, single broadcast).
    acc = jnp.broadcast_to(b_ref[...], (PC, L)).astype(jnp.float32)
    for t in range(M * M):                        # static unroll over the M*M taps
        j, m = divmod(t, M)
        off = j * Wpad + m                        # static lane offset of this tap
        acc = acc + jnp.dot(w_ref[t], xs[:, off:off + L],
                            preferred_element_type=jnp.float32)
    o_ref[0, 0, :, :] = acc.astype(o_ref.dtype)


def upsample_conv_transpose2d(x_nchw, weight, bias, *, stride, tq=8):
    """ConvTranspose2d forward (padding=0, output_padding=0, dilation=1, groups=1).

    x_nchw : (N, Cin, H, W)
    weight : (Cin, Cout, K, K)    -- PyTorch ConvTranspose2d weight layout
    bias   : (Cout,)
    returns: (N, Cout, Hout, Wout) with Hout = (H-1)*stride + K
    """
    N, Cin, H, W = x_nchw.shape
    Cin_w, Cout, K, K2 = weight.shape
    assert Cin == Cin_w and K == K2
    s = int(stride)
    Hout = (H - 1) * s + K
    Wout = (W - 1) * s + K

    M = -(-K // s)                  # ceil(K/s): taps per phase (max) / halo size
    P = s * s                       # number of sub-pixel phases
    Hq = H + M - 1                  # output quotient rows (= ceil(Hout/s))
    Wq = W + M - 1
    Wpad = W + 2 * (M - 1)          # haloed row width

    # Row blocking: balanced blocks, each covering >= ~128 lanes (TQ*Wpad) if possible.
    tq_eff = max(tq, -(-128 // Wpad))
    R = max(1, Hq // tq_eff)
    TQ = -(-Hq // R)
    Hq_pad = R * TQ
    TB = TQ + M - 1                 # input rows per block (incl. halo)
    Hpad = Hq_pad + M - 1
    L = TQ * Wpad                   # output lanes per block
    Lb = -(-(TB * Wpad + M - 1) // 128) * 128   # input lanes per block (128-padded)

    # ---- input prep: zero halo, then per-row-block gather (duplicates M-1 halo rows
    #      per block) and flatten rows onto the lane axis. Pure layout plumbing.
    xpad = jnp.pad(x_nchw, ((0, 0), (0, 0),
                            (M - 1, Hpad - (M - 1) - H),
                            (M - 1, M - 1)))                       # (N, Cin, Hpad, Wpad)
    row_idx = (np.arange(R) * TQ)[:, None] + np.arange(TB)[None, :]  # (R, TB)
    xblk = xpad[:, :, row_idx, :]                                   # (N, Cin, R, TB, Wpad)
    xblk = jnp.transpose(xblk, (0, 2, 1, 3, 4)).reshape(N, R, Cin, TB * Wpad)
    xblk = jnp.pad(xblk, ((0, 0), (0, 0), (0, 0), (0, Lb - TB * Wpad)))

    # ---- packed sub-pixel weights (trace-time, tiny):
    # wpk[j*M+m, (ph*s+pw)*Cout+co, ci] = weight[ci, co, (M-1-j)*s+ph, (M-1-m)*s+pw]
    # and 0 whenever that tap falls outside the K x K kernel.
    jj = np.arange(M)
    phv = np.arange(s)
    kh = (M - 1 - jj)[:, None] * s + phv[None, :]                  # (M, s)
    kw = (M - 1 - jj)[:, None] * s + phv[None, :]                  # (M, s)
    vh, vw = kh < K, kw < K
    kh_c, kw_c = np.minimum(kh, K - 1), np.minimum(kw, K - 1)
    wg = weight[:, :, kh_c[:, :, None, None], kw_c[None, None, :, :]]  # (Cin,Cout,M,s,M,s)
    mask = vh[:, :, None, None] & vw[None, None, :, :]                  # (M,s,M,s)
    wg = wg * jnp.asarray(mask, weight.dtype)[None, None]
    # (ci, co, j, ph, m, pw) -> (j, m, ph, pw, co, ci) -> (M*M, P*Cout, Cin)
    wpk = jnp.transpose(wg, (2, 4, 3, 5, 1, 0)).reshape(M * M, P * Cout, Cin)
    bpk = jnp.tile(bias, P).reshape(P * Cout, 1)

    # ---- Pallas kernel over a (batch, output-row-block) grid.
    y_ph = pl.pallas_call(
        functools.partial(_convt_phase_kernel, M=M, Wpad=Wpad, L=L),
        out_shape=jax.ShapeDtypeStruct((N, R, P * Cout, L), x_nchw.dtype),
        grid=(N, R),
        in_specs=[
            pl.BlockSpec((1, 1, Cin, Lb), lambda n, r: (n, r, 0, 0)),
            # grid-invariant packed weights / bias (fetched once)
            pl.BlockSpec((M * M, P * Cout, Cin), lambda n, r: (0, 0, 0)),
            pl.BlockSpec((P * Cout, 1), lambda n, r: (0, 0)),
        ],
        out_specs=pl.BlockSpec((1, 1, P * Cout, L), lambda n, r: (n, r, 0, 0)),
        compiler_params=pltpu.CompilerParams(
            dimension_semantics=("parallel", "parallel"),
            vmem_limit_bytes=32 * 1024 * 1024),
    )(xblk, wpk, bpk)

    # ---- phase interleave (pixel shuffle): one transpose pass, then crop.
    y = y_ph.reshape(N, R, s, s, Cout, TQ, Wpad)
    y = jnp.transpose(y, (0, 4, 1, 5, 2, 6, 3))          # (N, Cout, R, TQ, s, Wpad, s)
    y = y.reshape(N, Cout, Hq_pad * s, Wpad * s)[:, :, :Hout, :Wout]
    return y


def _reference(x_nchw, weight, bias, *, stride):
    """Pure-XLA reference of ConvTranspose2d via lhs-dilated convolution."""
    K = weight.shape[2]
    w_oihw = jnp.flip(jnp.transpose(weight, (1, 0, 2, 3)), axis=(2, 3))
    y = lax.conv_general_dilated(
        x_nchw, w_oihw,
        window_strides=(1, 1),
        padding=[(K - 1, K - 1), (K - 1, K - 1)],
        lhs_dilation=(stride, stride),
        dimension_numbers=("NCHW", "OIHW", "NCHW"),
    )
    return y + bias[None, :, None, None]


if __name__ == "__main__":
    # Module config: Upsample(input_dim=4, output_dim=8, kernel=3, stride=2)
    N, Cin, H, W = 2, 4, 16, 16
    Cout, K, stride = 8, 3, 2

    key = jax.random.PRNGKey(0)
    kx, kw_key, kb = jax.random.split(key, 3)

    # Deterministic parameter init (PyTorch-style uniform fan-in bound).
    bound = 1.0 / math.sqrt(Cin * K * K)
    weight = jax.random.uniform(kw_key, (Cin, Cout, K, K), jnp.float32, -bound, bound)
    bias = jax.random.uniform(kb, (Cout,), jnp.float32, -bound, bound)
    x = jax.random.normal(kx, (N, Cin, H, W), jnp.float32)

    fwd = jax.jit(functools.partial(upsample_conv_transpose2d, stride=stride))
    out = jax.block_until_ready(fwd(x, weight, bias))

    ref = _reference(x, weight, bias, stride=stride)
    assert out.shape == (N, Cout, (H - 1) * stride + K, (W - 1) * stride + K)
    assert jnp.allclose(out, ref, atol=1e-4, rtol=1e-4), "mismatch vs XLA reference"

    print("KERNEL_OK")
</pallas_src>

<mosaic_0001>
module attributes {stable_mosaic.version = 11 : i64} {
  func.func @_convt_phase_kernel(%arg0: i32, %arg1: i32, %arg2: memref<1x1x4x256xf32, #tpu.memory_space<vmem>>, %arg3: memref<4x32x4xf32, #tpu.memory_space<vmem>>, %arg4: memref<32x1xf32, #tpu.memory_space<vmem>>, %arg5: memref<1x1x32x162xf32, #tpu.memory_space<vmem>>) attributes {dimension_semantics = [#tpu.dimension_semantics<parallel>, #tpu.dimension_semantics<parallel>], iteration_bounds = array<i64: 2, 2>, scalar_prefetch = 0 : i64, scratch_operands = 0 : i64, tpu.core_type = #tpu.core_type<tc>, window_params = [{transform_indices = @transform_0, window_bounds = array<i64: 1, 1, 4, 256>}, {pipeline_mode = #tpu.pipeline_mode<synchronous>, transform_indices = @transform_1, window_bounds = array<i64: 4, 32, 4>}, {pipeline_mode = #tpu.pipeline_mode<synchronous>, transform_indices = @transform_2, window_bounds = array<i64: 32, 1>}, {transform_indices = @transform_3, window_bounds = array<i64: 1, 1, 32, 162>}]} {
    %c0 = arith.constant 0 : index
    %c0_0 = arith.constant 0 : index
    %c0_1 = arith.constant 0 : index
    %c0_2 = arith.constant 0 : index
    %0 = vector.load %arg2[%c0, %c0_0, %c0_1, %c0_2] : memref<1x1x4x256xf32, #tpu.memory_space<vmem>>, vector<1x1x4x256xf32>
    %1 = vector.shape_cast %0 : vector<1x1x4x256xf32> to vector<4x256xf32>
    %c0_3 = arith.constant 0 : index
    %c0_4 = arith.constant 0 : index
    %2 = vector.load %arg4[%c0_3, %c0_4] : memref<32x1xf32, #tpu.memory_space<vmem>>, vector<32x1xf32>
    %3 = vector.shape_cast %2 : vector<32x1xf32> to vector<32x1xf32>
    %4 = vector.broadcast %3 : vector<32x1xf32> to vector<32x162xf32>
    %c0_5 = arith.constant 0 : index
    %c0_6 = arith.constant 0 : index
    %c0_7 = arith.constant 0 : index
    %5 = vector.load %arg3[%c0_5, %c0_6, %c0_7] : memref<4x32x4xf32, #tpu.memory_space<vmem>>, vector<1x32x4xf32>
    %6 = vector.shape_cast %5 : vector<1x32x4xf32> to vector<32x4xf32>
    %7 = vector.extract_strided_slice %1 {offsets = [0, 0], sizes = [4, 162], strides = [1, 1]} : vector<4x256xf32> to vector<4x162xf32>
    %cst = arith.constant dense<0.000000e+00> : vector<32x162xf32>
    %8 = tpu.matmul %6, %7, %cst {dimension_numbers = #tpu.dot_dimension_numbers<[1], [0], [0], [1], [0, 0, 1, 1], [], []>} : vector<32x4xf32>, vector<4x162xf32>, vector<32x162xf32> -> vector<32x162xf32>
    %9 = arith.addf %4, %8 : vector<32x162xf32>
    %c1 = arith.constant 1 : index
    %c0_8 = arith.constant 0 : index
    %c0_9 = arith.constant 0 : index
    %10 = vector.load %arg3[%c1, %c0_8, %c0_9] : memref<4x32x4xf32, #tpu.memory_space<vmem>>, vector<1x32x4xf32>
    %11 = vector.shape_cast %10 : vector<1x32x4xf32> to vector<32x4xf32>
    %12 = vector.extract_strided_slice %1 {offsets = [0, 1], sizes = [4, 162], strides = [1, 1]} : vector<4x256xf32> to vector<4x162xf32>
    %cst_10 = arith.constant dense<0.000000e+00> : vector<32x162xf32>
    %13 = tpu.matmul %11, %12, %cst_10 {dimension_numbers = #tpu.dot_dimension_numbers<[1], [0], [0], [1], [0, 0, 1, 1], [], []>} : vector<32x4xf32>, vector<4x162xf32>, vector<32x162xf32> -> vector<32x162xf32>
    %14 = arith.addf %9, %13 : vector<32x162xf32>
    %c2 = arith.constant 2 : index
    %c0_11 = arith.constant 0 : index
    %c0_12 = arith.constant 0 : index
    %15 = vector.load %arg3[%c2, %c0_11, %c0_12] : memref<4x32x4xf32, #tpu.memory_space<vmem>>, vector<1x32x4xf32>
    %16 = vector.shape_cast %15 : vector<1x32x4xf32> to vector<32x4xf32>
    %17 = vector.extract_strided_slice %1 {offsets = [0, 18], sizes = [4, 162], strides = [1, 1]} : vector<4x256xf32> to vector<4x162xf32>
    %cst_13 = arith.constant dense<0.000000e+00> : vector<32x162xf32>
    %18 = tpu.matmul %16, %17, %cst_13 {dimension_numbers = #tpu.dot_dimension_numbers<[1], [0], [0], [1], [0, 0, 1, 1], [], []>} : vector<32x4xf32>, vector<4x162xf32>, vector<32x162xf32> -> vector<32x162xf32>
    %19 = arith.addf %14, %18 : vector<32x162xf32>
    %c3 = arith.constant 3 : index
    %c0_14 = arith.constant 0 : index
    %c0_15 = arith.constant 0 : index
    %20 = vector.load %arg3[%c3, %c0_14, %c0_15] : memref<4x32x4xf32, #tpu.memory_space<vmem>>, vector<1x32x4xf32>
    %21 = vector.shape_cast %20 : vector<1x32x4xf32> to vector<32x4xf32>
    %22 = vector.extract_strided_slice %1 {offsets = [0, 19], sizes = [4, 162], strides = [1, 1]} : vector<4x256xf32> to vector<4x162xf32>
    %cst_16 = arith.constant dense<0.000000e+00> : vector<32x162xf32>
    %23 = tpu.matmul %21, %22, %cst_16 {dimension_numbers = #tpu.dot_dimension_numbers<[1], [0], [0], [1], [0, 0, 1, 1], [], []>} : vector<32x4xf32>, vector<4x162xf32>, vector<32x162xf32> -> vector<32x162xf32>
    %24 = arith.addf %19, %23 : vector<32x162xf32>
    %c0_17 = arith.constant 0 : index
    %c0_18 = arith.constant 0 : index
    %c0_19 = arith.constant 0 : index
    %c0_20 = arith.constant 0 : index
    %25 = vector.load %arg5[%c0_17, %c0_18, %c0_19, %c0_20] : memref<1x1x32x162xf32, #tpu.memory_space<vmem>>, vector<1x1x32x162xf32>
    %26 = vector.shape_cast %25 : vector<1x1x32x162xf32> to vector<32x162xf32>
    %27 = vector.shape_cast %24 : vector<32x162xf32> to vector<1x1x32x162xf32>
    tpu.vector_store %arg5[%c0_17, %c0_18, %c0_19, %c0_20], %27 {strides = array<i32>} : memref<1x1x32x162xf32, #tpu.memory_space<vmem>>, vector<1x1x32x162xf32>,
    return
  }
  func.func @transform_0(%arg0: i32, %arg1: i32) -> (i32, i32, i32, i32) {
    %c0_i32 = arith.constant 0 : i32
    %c0_i32_0 = arith.constant 0 : i32
    %c0_i32_1 = arith.constant 0 : i32
    return %arg0, %arg1, %c0_i32, %c0_i32_0 : i32, i32, i32, i32
  }
  func.func @transform_1(%arg0: i32, %arg1: i32) -> (i32, i32, i32) {
    %c0_i32 = arith.constant 0 : i32
    %c0_i32_0 = arith.constant 0 : i32
    %c0_i32_1 = arith.constant 0 : i32
    %c0_i32_2 = arith.constant 0 : i32
    return %c0_i32, %c0_i32_0, %c0_i32_1 : i32, i32, i32
  }
  func.func @transform_2(%arg0: i32, %arg1: i32) -> (i32, i32) {
    %c0_i32 = arith.constant 0 : i32
    %c0_i32_0 = arith.constant 0 : i32
    %c0_i32_1 = arith.constant 0 : i32
    return %c0_i32, %c0_i32_0 : i32, i32
  }
  func.func @transform_3(%arg0: i32, %arg1: i32) -> (i32, i32, i32, i32) {
    %c0_i32 = arith.constant 0 : i32
    %c0_i32_0 = arith.constant 0 : i32
    %c0_i32_1 = arith.constant 0 : i32
    return %arg0, %arg1, %c0_i32, %c0_i32_0 : i32, i32, i32, i32
  }
}

</mosaic_0001>

<bundles_post_ra>
// kernel: tile.8
= control target key start
LH: loop header
LB: loop body
LE: loop exit
PB: predicated region body
PF: predicated region fallthrough
CT: control target
= control target key end

     0   :  { %2 = vsyncpa [#allocation1], 0  ;;  %s42_s6 = smov [#allocation0]   ;;  %s59_s0 = inlined_call_operand.hbm [shape: f32[8], index: 0, kind: input, shape index: {}]   ;;  %s60_s1 = inlined_call_operand.vmem [shape: f32[4,8], index: 1, kind: output, shape index: {}]  }
   0x1   :  { %s9_s7 = sshll.u32 %s42_s6, 4  ;;  %s10_s7 = int_to_ptr.vmem [resolvable:$true] %s9_s7 }
   0x2   :  { %s28_s8 = scalar_lea.vmem %s10_s7, 16  ;;  %s32_s9 = scalar_lea.vmem %s10_s7, 32 }
   0x3   :  { %p29_p0 = scmp.ne.s32.totalorder %s10_s7, %s28_s8  ;;  %p33_p1 = scmp.lt.s32.totalorder %s10_s7, %s10_s7 }
   0x4   :  { %p34_p2 = scmp.lt.s32.totalorder %s32_s9, %s28_s8 }
   0x6   :  { %p35_p3 = por %p34_p2, %p33_p1 }
   0x8   :  { %p36_p4 = pnand %p35_p3, %p29_p0 }
   0xa   :  { %39 = shalt.err (!%p36_p4)
}
   0xb   :  { %12 = dma.hbm_to_vmem [thread:$0]  %s59_s0, 16, %s10_s7, [#allocation1]  }
   0xc   :  { %40 = dma.done.wait [#allocation1], 16  }
   0xd   :  { %41 = vsyncadd [#allocation1], 4294967280  ;;  %v16_v0 = vld [vmem:[#allocation0] ss:$0 sm:$0xff] }
   0xe   :  { %17 = vst [vmem:[%s60_s1] sm:$0xf] %v16_v0 }
   0xf   :  { %18 = vsyncpa [#allocation1], 1 }

// kernel: tile.0
= control target key start
LH: loop header
LB: loop body
LE: loop exit
PB: predicated region body
PF: predicated region fallthrough
CT: control target
= control target key end

     0   :  { %s67_s8 = smov 125   ;;  %vm8_vm0 = vcmask 7168   ;;  %s68_s11 = smov 126   ;;  %s118_s0 = inlined_call_operand.vmem [shape: f32[4,8], index: 0, kind: input, shape index: {}]   ;;  %s119_s1 = inlined_call_operand.vmem [shape: f32[32,1], index: 1, kind: output, shape index: {}]  }
   0x1   :  { %v5_v0 = vld [vmem:[%s118_s0] sm:$0xf]  ;;  %s66_s0 = smov 127   ;;  %s69_s12 = smov 124  }
   0x2   :  { %6 = vst [vmem:[#allocation0] sm:$0xf] %v5_v0  ;;  %s70_s13 = smov 123   ;;  %s71_s14 = smov 122  }
   0x3   :  { %s72_s15 = smov 121  }
   0x9   :  { %v10_v1 = vld [vmem:[#allocation0] sm:$0xf]  }
   0xa   :  { %v22_v2 = vld [vmem:[#allocation0] sm:$0xf]   ;;  %11 = vrot.lane.b32.xlu0 %v10_v1, %s66_s0 }
   0xb   :  { %23 = vrot.lane.b32.xlu1 %v22_v2, %s67_s8  ;;  %v16_v3 = vld [vmem:[#allocation0] sm:$0xf]  }
   0xc   :  { %v28_v4 = vld [vmem:[#allocation0] sm:$0xf]  }
   0xd   :  { %v7_v5 = vld [vmem:[#allocation0] sm:$0xf]  }
   0xe   :  { %9 = vst.msk [vmem:[%s119_s1] ss:$8 sm:$0xf] %vm8_vm0, %v7_v5   ;;  %17 = vrot.lane.b32.xlu0 %v16_v3, %s68_s11  ;;  %v34_v6 = vld [vmem:[#allocation0] sm:$0xf]  }
   0xf   :  { %29 = vrot.lane.b32.xlu1 %v28_v4, %s69_s12  ;;  %v40_v7 = vld [vmem:[#allocation0] sm:$0xf]  }
  0x10   :  { %v46_v8 = vld [vmem:[#allocation0] sm:$0xf]  }
  0x12   :  { %35 = vrot.lane.b32.xlu0 %v34_v6, %s70_s13 }
  0x13   :  { %41 = vrot.lane.b32.xlu1 %v40_v7, %s71_s14 }
  0x16   :  { %47 = vrot.lane.b32.xlu0 %v46_v8, %s72_s15 }
  0x7c   :  { %v12_v9 = vpop.permute.xlu0 %11  }
  0x7d   :  { %v24_v10 = vpop.permute.xlu1 %23   ;;  %52 = vst.msk [vmem:[%s119_s1 + $0x1] ss:$8 sm:$0xf] %vm8_vm0, %v12_v9  }
  0x7e   :  { %54 = vst.msk [vmem:[%s119_s1 + $0x3] ss:$8 sm:$0xf] %vm8_vm0, %v24_v10  }
  0x80   :  { %v18_v11 = vpop.permute.xlu0 %17  }
  0x81   :  { %v30_v12 = vpop.permute.xlu1 %29   ;;  %53 = vst.msk [vmem:[%s119_s1 + $0x2] ss:$8 sm:$0xf] %vm8_vm0, %v18_v11  }
  0x82   :  { %55 = vst.msk [vmem:[%s119_s1 + $0x4] ss:$8 sm:$0xf] %vm8_vm0, %v30_v12  }
  0x84   :  { %v36_v13 = vpop.permute.xlu0 %35  }
  0x85   :  { %v42_v14 = vpop.permute.xlu1 %41   ;;  %56 = vst.msk [vmem:[%s119_s1 + $0x5] ss:$8 sm:$0xf] %vm8_vm0, %v36_v13  }
  0x86   :  { %57 = vst.msk [vmem:[%s119_s1 + $0x6] ss:$8 sm:$0xf] %vm8_vm0, %v42_v14  }
  0x88   :  { %v48_v15 = vpop.permute.xlu0 %47  }
  0x89   :  { %58 = vst.msk [vmem:[%s119_s1 + $0x7] ss:$8 sm:$0xf] %vm8_vm0, %v48_v15  }

// kernel: upsample_conv_transpose2d.1
= control target key start
LH: loop header
LB: loop body
LE: loop exit
PB: predicated region body
PF: predicated region fallthrough
CT: control target
= control target key end

     0   :  { %s991_s12 = smov 0   ;;  %s993_s13 = smov 0   ;;  %s1159_s0 = inlined_call_operand.vmem [shape: f32[2,2,4,256], index: 0, kind: input, shape index: {}]   ;;  %s1160_s1 = inlined_call_operand.vmem [shape: f32[4,32,4], index: 1, kind: input, shape index: {}]   ;;  %s1161_s2 = inlined_call_operand.vmem [shape: f32[32,1], index: 2, kind: input, shape index: {}]   ;;  %s1162_s3 = inlined_call_operand.vmem [shape: f32[2,2,32,162], index: 3, kind: output, shape index: {}]  }
   0x1   :  { %s995_s14 = smov 0   ;;  %s997_s15 = smov 0  }
   0x2   :  { %s999_s16 = smov 0  }
   0x3 LB: > { %s22_s17 = sadd.s32 1, %s956_s14  ;;  %s25_s18 = sadd.s32 1, %s960_s15  ;;  %s964_s16 = sphi %s999_s16, %s13_s16   ;;  %s960_s15 = sphi %s997_s15, %s1166_s15   ;;  %s956_s14 = sphi %s995_s14, %s1165_s14   ;;  %s952_s13 = sphi %s993_s13, %s1164_s13   ;;  %s948_s12 = sphi %s991_s12, %s1163_s12  }
   0x4   : > { %p23_p0 = scmp.ge.s32.totalorder %s22_s17, 2  ;;  %p833_p1 = scmp.ge.s32.totalorder %s964_s16, 1 }
   0x5   : > { %p157_p2 = scmp.lt.s32.totalorder %s964_s16, 5 }
   0x6   : > { %s1168_s17 = smov (%p23_p0, %s22_s17), 0  ;;  %s1170_s18 = smov (!%p23_p0, %s25_s18), %s960_s15 }
   0x7   : > { %p158_p3 = pnand %p833_p1, %p157_p2  ;;  %p27_p4 = scmp.ge.s32.totalorder %s1170_s18, 2 }
   0x8   : > { %p189_p5 = scmp.lt.s32.totalorder (!%p158_p3), %s952_s13, 1  ;;  %p191_p6 = scmp.lt.s32.totalorder (!%p158_p3), %s948_s12, 1 }
   0x9   : > { %s1172_s18 = smov (%p27_p4, %s1170_s18), 0  ;;  %161 = sbr.rel (%p158_p3) target bundleno = 368 (0x170), region = 32 }
   0xa   : > { %s967_s29 = smov (!%p158_p3), 110   ;;  %s968_s30 = smov (!%p158_p3), 127  }
   0xb   : > { %s969_s8 = smov (!%p158_p3), 109  }
   0xe   : > { %v966_v0 = vmov 0.0   ;;  %s1174_s13 = smov (!%p189_p5, %s952_s13), 1  ;;  %s1176_s12 = smov (!%p191_p6, %s948_s12), 1  ;;  %vm251_vm0 = vcmask 1043456   ;;  %v232_v3 = vld [vmem:[%s1160_s1] sm:$0xff]  ;;  %vm238_vm1 = vcmask 31744  }
   0xf   : > { %320 = vmatprep.mubr.f32.mxu0 %v966_v0  ;;  %444 = vmatprep.mubr.f32.mxu1 %v966_v0  ;;  %s835_s19 = sshll.u32 %s1174_s13, 2  ;;  %s838_s20 = sshll.u32 %s1174_s13, 4  ;;  %v233_v4 = vld [vmem:[%s1160_s1 + $0x8] sm:$0xff]  ;;  %v234_v5 = vld [vmem:[%s1160_s1 + $0x10] sm:$0xff]  ;;  %v235_v6 = vld [vmem:[%s1160_s1 + $0x18] sm:$0xff]  ;;  %v970_v9 = vmov 0  }
  0x10   : > { %s834_s21 = sshll.u32 %s1176_s12, 1  ;;  %s837_s22 = sshll.u32 %s1176_s12, 3  ;;  %v208_v7 = vld [vmem:[%s1161_s2] sm:$0xff]  ;;  %v209_v8 = vld [vmem:[%s1161_s2 + $0x8] sm:$0xff]  ;;  %923 = vset.pattern.permute.xlu0 %v970_v9  ;;  %924 = vset.pattern.permute.xlu1 %v970_v9  ;;  %v210_v10 = vld [vmem:[%s1161_s2 + $0x10] sm:$0xff]  ;;  %vm486_vm2 = vcmask 900096  }
  0x11   : > { %s195_s23 = sadd.s32 %s835_s19, %s834_s21  ;;  %s1023_s24 = sadd.s32 %s838_s20, %s837_s22  ;;  %v211_v11 = vld [vmem:[%s1161_s2 + $0x18] sm:$0xff]  ;;  %vm362_vm3 = vcmask 1039360   ;;  %v846_v16 = vld [vmem:[%s1160_s1 + $0x20] sm:$0xff]  ;;  %vm610_vm4 = vcmask 891904   ;;  %v847_v22 = vld [vmem:[%s1160_s1 + $0x28] sm:$0xff]  ;;  %vm726_vm5 = vcmask 277504  }
  0x12   : > { %s836_s25 = sshll.u32 %s195_s23, 2  ;;  %v856_v17 = vld [vmem:[%s1160_s1 + $0x40] sm:$0xff]  ;;  %v857_v23 = vld [vmem:[%s1160_s1 + $0x48] sm:$0xff]  ;;  %v848_v25 = vld [vmem:[%s1160_s1 + $0x30] sm:$0xff] }
  0x13   : > { %s197_s28 = scalar_lea.vmem %s1159_s0, %s836_s25  ;;  %v858_v26 = vld [vmem:[%s1160_s1 + $0x50] sm:$0xff]  ;;  %v849_v27 = vld [vmem:[%s1160_s1 + $0x38] sm:$0xff]  ;;  %v866_v29 = vld [vmem:[%s1160_s1 + $0x60] sm:$0xff] }
  0x14   : > { %v207_v1 = vld [vmem:[%s197_s28] sm:$0xff]  ;;  %v859_v28 = vld [vmem:[%s1160_s1 + $0x58] sm:$0xff]  ;;  %v867_v30 = vld [vmem:[%s1160_s1 + $0x68] sm:$0xff] }
  0x15   : > { %482 = vrot.lane.b32.xlu1 %v207_v1, %s967_s29  ;;  %358 = vrot.lane.b32.xlu0 %v207_v1, %s968_s30  ;;  %v237_v2 = vcombine.high %v207_v1, %v207_v1  ;;  %v868_v31 = vld [vmem:[%s1160_s1 + $0x70] sm:$0xff]  ;;  %v869_v32 = vld [vmem:[%s1160_s1 + $0x78] sm:$0xff] }
  0x17   : > { %840 = vmatprep.subr.msk.mxu0 %vm251_vm0, %v237_v2 }
  0x18   : > { %841 = vmatpush1.msk.msra.mxu0 %vm251_vm0, %v207_v1 }
  0x19   : > { %484 = vrot.lane.b32.xlu1 %v237_v2, %s967_s29  ;;  %360 = vrot.lane.b32.xlu0 %v237_v2, %s968_s30  ;;  %s839_s30 = sshll.u32 %s1023_s24, 3 }
  0x1a   : > { %842 = vmatmul.mubr.msk.f32.vlgmr.msra.gmra.mxu0 %vm238_vm1, %v232_v3  ;;  %s1130_s6 = scalar_lea.vmem %s1162_s3, %s839_s30 }
  0x1b   : > { %326 = vmatprep.mubr.f32.mxu0 %v966_v0 }
  0x1d   : > { %608 = vrot.lane.b32.xlu1 %v237_v2, %s969_s8  ;;  %606 = vrot.lane.b32.xlu0 %v207_v1, %s969_s8 }
  0x1e   : > { %843 = vmatmul.mubr.msk.f32.gmra.mxu0 %vm238_vm1, %v233_v4 }
  0x1f   : > { %332 = vmatprep.mubr.f32.mxu0 %v966_v0 }
  0x21   : > { %214 = vperm.xlu0 %923, %v208_v7   ;;  %219 = vperm.xlu1 %924, %v209_v8  }
  0x22   : > { %844 = vmatmul.mubr.msk.f32.gmra.mxu0 %vm238_vm1, %v234_v5 }
  0x23   : > { %338 = vmatprep.mubr.f32.mxu0 %v966_v0 }
  0x25   : > { %224 = vperm.xlu1 %924, %v210_v10   ;;  %229 = vperm.xlu0 %923, %v211_v11  }
  0x26   : > { %845 = vmatmul.mubr.msk.f32.gmra.mxu0 %vm238_vm1, %v235_v6 }
  0x27   : > { %568 = vmatprep.mubr.f32.mxu0 %v966_v0 }
  0x87   : > { %v483_v12 = vpop.permute.xlu1 %482  ;;  %v359_v13 = vpop.permute.xlu0 %358 }
  0x8b   : > { %v485_v14 = vpop.permute.xlu1 %484  ;;  %v361_v15 = vpop.permute.xlu0 %360 }
  0x8c   : > { %v487_v18 = vsel %vm486_vm2, %v483_v12, %v485_v14  ;;  %850 = vmatprep.subr.msk.mxu1 %vm251_vm0, %v361_v15  ;;  %860 = vmatprep.subr.msk.mxu0 %vm251_vm0, %v485_v14  ;;  %v363_v19 = vsel %vm362_vm3, %v359_v13, %v361_v15 }
  0x8d   : > { %851 = vmatpush1.msk.msra.mxu1 %vm251_vm0, %v363_v19  ;;  %861 = vmatpush1.msk.msra.mxu0 %vm251_vm0, %v487_v18 }
  0x8e   : > { %852 = vmatmul.mubr.msk.f32.vlgmr.msra.gmra.mxu1 %vm238_vm1, %v846_v16  ;;  %862 = vmatmul.mubr.msk.f32.vlgmr.msra.gmra.mxu0 %vm238_vm1, %v856_v17 }
  0x8f   : > { %v609_v20 = vpop.permute.xlu1 %608  ;;  %v607_v21 = vpop.permute.xlu0 %606  ;;  %450 = vmatprep.mubr.f32.mxu1 %v966_v0  ;;  %574 = vmatprep.mubr.f32.mxu0 %v966_v0 }
  0x90   : > { %v611_v24 = vsel %vm610_vm4, %v607_v21, %v609_v20  ;;  %870 = vmatprep.subr.msk.mxu1 %vm251_vm0, %v609_v20 }
  0x91   : > { %871 = vmatpush1.msk.msra.mxu1 %vm251_vm0, %v611_v24 }
  0x92   : > { %853 = vmatmul.mubr.msk.f32.gmra.mxu1 %vm238_vm1, %v847_v22  ;;  %863 = vmatmul.mubr.msk.f32.gmra.mxu0 %vm238_vm1, %v857_v23 }
  0x93   : > { %456 = vmatprep.mubr.f32.mxu1 %v966_v0  ;;  %580 = vmatprep.mubr.f32.mxu0 %v966_v0 }
  0x96   : > { %854 = vmatmul.mubr.msk.f32.gmra.mxu1 %vm238_vm1, %v848_v25  ;;  %864 = vmatmul.mubr.msk.f32.gmra.mxu0 %vm238_vm1, %v858_v26 }
  0x97   : > { %462 = vmatprep.mubr.f32.mxu1 %v966_v0  ;;  %586 = vmatprep.mubr.f32.mxu0 %v966_v0 }
  0x9a   : > { %855 = vmatmul.mubr.msk.f32.gmra.mxu1 %vm238_vm1, %v849_v27  ;;  %865 = vmatmul.mubr.msk.f32.gmra.mxu0 %vm238_vm1, %v859_v28 }
  0x9b   : > { %692 = vmatprep.mubr.f32.mxu1 %v966_v0 }
  0x9c   : > { %v215_v45 = vpop.permute.xlu0 %214  ;;  %v220_v47 = vpop.permute.xlu1 %219 }
  0x9e   : > { %872 = vmatmul.mubr.msk.f32.vlgmr.msra.gmra.mxu1 %vm238_vm1, %v866_v29 }
  0x9f   : > { %698 = vmatprep.mubr.f32.mxu1 %v966_v0 }
  0xa0   : > { %v225_v57 = vpop.permute.xlu1 %224  ;;  %v230_v2 = vpop.permute.xlu0 %229 }
  0xa2   : > { %873 = vmatmul.mubr.msk.f32.gmra.mxu1 %vm238_vm1, %v867_v30 }
  0xa3   : > { %704 = vmatprep.mubr.f32.mxu1 %v966_v0 }
  0xa6   : > { %874 = vmatmul.mubr.msk.f32.gmra.mxu1 %vm238_vm1, %v868_v31 }
  0xa7   : > { %710 = vmatprep.mubr.f32.mxu1 %v966_v0 }
  0xaa   : > { %875 = vmatmul.mubr.msk.f32.gmra.mxu1 %vm238_vm1, %v869_v32 }
  0xda   : > { %v322_v33 = vpop.f32.mrf.mxu0 }
  0xdb   : > { %v345_v50 = vadd.f32 %v322_v33, %v215_v45 }
  0xdc   : > { %v324_v34 = vpop.f32.mrf.mxu0 }
  0xdd   : > { %v346_v54 = vadd.f32 %v324_v34, %v215_v45 }
  0xde   : > { %v328_v35 = vpop.f32.mrf.mxu0 }
  0xdf   : > { %v347_v56 = vadd.f32 %v328_v35, %v220_v47 }
  0xe0   : > { %v330_v36 = vpop.f32.mrf.mxu0 }
  0xe1   : > { %v348_v63 = vadd.f32 %v330_v36, %v220_v47 }
  0xe2   : > { %v334_v37 = vpop.f32.mrf.mxu0 }
  0xe3   : > { %v349_v1 = vadd.f32 %v334_v37, %v225_v57 }
  0xe4   : > { %v336_v38 = vpop.f32.mrf.mxu0 }
  0xe5   : > { %v350_v7 = vadd.f32 %v336_v38, %v225_v57 }
  0xe6   : > { %v340_v39 = vpop.f32.mrf.mxu0 }
  0xe7   : > { %v351_v12 = vadd.f32 %v340_v39, %v230_v2 }
  0xe8   : > { %v342_v40 = vpop.f32.mrf.mxu0 }
  0xe9   : > { %v352_v21 = vadd.f32 %v342_v40, %v230_v2 }
 0x14e   : > { %v446_v41 = vpop.f32.mrf.mxu1  ;;  %v570_v42 = vpop.f32.mrf.mxu0 }
 0x14f   : > { %v469_v55 = vadd.f32 %v446_v41, %v345_v50 }
 0x150   : > { %v448_v43 = vpop.f32.mrf.mxu1  ;;  %v572_v44 = vpop.f32.mrf.mxu0 }
 0x151   : > { %v470_v59 = vadd.f32 %v448_v43, %v346_v54  ;;  %v593_v62 = vadd.f32 %v570_v42, %v469_v55 }
 0x152   : > { %v452_v46 = vpop.f32.mrf.mxu1  ;;  %v576_v49 = vpop.f32.mrf.mxu0 }
 0x153   : > { %v471_v0 = vadd.f32 %v452_v46, %v347_v56  ;;  %v594_v4 = vadd.f32 %v572_v44, %v470_v59 }
 0x154   : > { %v454_v48 = vpop.f32.mrf.mxu1  ;;  %v578_v52 = vpop.f32.mrf.mxu0 }
 0x155   : > { %v472_v5 = vadd.f32 %v454_v48, %v348_v63  ;;  %v595_v10 = vadd.f32 %v576_v49, %v471_v0 }
 0x156   : > { %v458_v51 = vpop.f32.mrf.mxu1  ;;  %v582_v60 = vpop.f32.mrf.mxu0 }
 0x157   : > { %v473_v11 = vadd.f32 %v458_v51, %v349_v1  ;;  %v596_v15 = vadd.f32 %v578_v52, %v472_v5 }
 0x158   : > { %v460_v53 = vpop.f32.mrf.mxu1  ;;  %v584_v8 = vpop.f32.mrf.mxu0 }
 0x159   : > { %v474_v16 = vadd.f32 %v460_v53, %v350_v7  ;;  %v597_v20 = vadd.f32 %v582_v60, %v473_v11 }
 0x15a   : > { %v464_v58 = vpop.f32.mrf.mxu1  ;;  %v588_v18 = vpop.f32.mrf.mxu0 }
 0x15b   : > { %v475_v22 = vadd.f32 %v464_v58, %v351_v12  ;;  %v598_v25 = vadd.f32 %v584_v8, %v474_v16 }
 0x15c   : > { %v466_v61 = vpop.f32.mrf.mxu1  ;;  %v590_v28 = vpop.f32.mrf.mxu0 }
 0x15d   : > { %v476_v26 = vadd.f32 %v466_v61, %v352_v21  ;;  %v599_v30 = vadd.f32 %v588_v18, %v475_v22 }
 0x15e   : > { %v694_v3 = vpop.f32.mrf.mxu1 }
 0x15f   : > { %v717_v6 = vadd.f32 %v694_v3, %v593_v62  ;;  %v600_v33 = vadd.f32 %v590_v28, %v476_v26 }
 0x160   : > { %v696_v9 = vpop.f32.mrf.mxu1 }
 0x161   : > { %725 = vst [vmem:[%s1130_s6] sm:$0xff] %v717_v6  ;;  %v718_v13 = vadd.f32 %v696_v9, %v594_v4 }
 0x162   : > { %v700_v14 = vpop.f32.mrf.mxu1 }
 0x163   : > { %727 = vst.msk [vmem:[%s1130_s6 + $0x8] sm:$0xff] %vm726_vm5, %v718_v13  ;;  %v719_v17 = vadd.f32 %v700_v14, %v595_v10 }
 0x164   : > { %v702_v19 = vpop.f32.mrf.mxu1 }
 0x165   : > { %728 = vst [vmem:[%s1130_s6 + $0x10] sm:$0xff] %v719_v17  ;;  %v720_v23 = vadd.f32 %v702_v19, %v596_v15 }
 0x166   : > { %v706_v24 = vpop.f32.mrf.mxu1 }
 0x167   : > { %729 = vst.msk [vmem:[%s1130_s6 + $0x18] sm:$0xff] %vm726_vm5, %v720_v23  ;;  %v721_v27 = vadd.f32 %v706_v24, %v597_v20 }
 0x168   : > { %v708_v29 = vpop.f32.mrf.mxu1 }
 0x169   : > { %730 = vst [vmem:[%s1130_s6 + $0x20] sm:$0xff] %v721_v27  ;;  %v722_v31 = vadd.f32 %v708_v29, %v598_v25 }
 0x16a   : > { %v712_v32 = vpop.f32.mrf.mxu1 }
 0x16b   : > { %731 = vst.msk [vmem:[%s1130_s6 + $0x28] sm:$0xff] %vm726_vm5, %v722_v31  ;;  %v723_v34 = vadd.f32 %v712_v32, %v599_v30 }
 0x16c   : > { %v714_v35 = vpop.f32.mrf.mxu1 }
 0x16d   : > { %732 = vst [vmem:[%s1130_s6 + $0x30] sm:$0xff] %v723_v34  ;;  %v724_v36 = vadd.f32 %v714_v35, %v600_v33 }
 0x16f   : > { %733 = vst.msk [vmem:[%s1130_s6 + $0x38] sm:$0xff] %vm726_vm5, %v724_v36 }
 0x170 PF: > { %s13_s16 = sadd.s32 1, %s964_s16   ;;  %s1163_s12 = smov %s956_s14 }
 0x171   : > { %p10_p7 = scmp.ge.s32.totalorder %s13_s16, 6   ;;  %s1164_s13 = smov %s960_s15 }
 0x172   : > { %s1165_s14 = smov %s1168_s17  ;;  %s1166_s15 = smov %s1172_s18 }
 0x173   :  { %12 = sbr.rel (!%p10_p7) target bundleno = 3 (0x3), region = 65 }

</bundles_post_ra>
